<compile_context>
chip_gen: v7x
topology: tpu7x:2x2x1
jax: 0.10.0
libtpu: 0.0.40
codegen_flags: <defaults>
</compile_context>

<pallas_src>
import functools

import jax
import jax.numpy as jnp
from jax.experimental import pallas as pl
from jax.experimental.pallas import tpu as pltpu


def _round_up(n, m):
    return ((n + m - 1) // m) * m


# Conservative VMEM budget (fits v7x's 32 MiB default scoped limit with headroom).
# Per batch-row bytes: x tile lane-padded to 128 lanes (512 B) x 2 buffers
#                      + h temp (128 x tb f32 = 512 B) + packed output x 2 buffers (~64 B).
_VMEM_BUDGET_BYTES = 20 * 1024 * 1024
_VMEM_BYTES_PER_BATCH_ROW = 2 * 512 + 512 + 2 * 32
_TB_MAX = (_VMEM_BUDGET_BYTES // _VMEM_BYTES_PER_BATCH_ROW) // 128 * 128


def _make_qnet_kernel(action_dim, emit_q, emit_act):
    def kernel(x_ref, w1_ref, b1_ref, w2_ref, b2_ref, out_ref):
        # fc1: contract w1^T (H, S) with the x tile (tb, S) over S -> h (H, tb).
        # Batch ends up on lanes; the x relayout is done on-chip, not in the wrapper.
        h = jax.lax.dot_general(
            w1_ref[...], x_ref[...],
            dimension_numbers=(((1,), (1,)), ((), ())),
            preferred_element_type=jnp.float32,
        )
        h = jnp.maximum(h + b1_ref[...], 0.0)                       # bias (H,1) bcasts on lanes

        # fc2: (A, H) @ (H, tb) -> (A, tb).
        q = jnp.dot(w2_ref[...], h, preferred_element_type=jnp.float32) + b2_ref[...]

        if emit_q:
            out_ref[0:action_dim, :] = q

        if emit_act:
            if action_dim == 2:
                # One VPU compare per vreg; strict '>' keeps argmax's first-index
                # tie-break and yields a valid action (0) even for NaN columns.
                act = (q[1:2, :] > q[0:1, :]).astype(jnp.int32)
            else:
                idx = jax.lax.broadcasted_iota(jnp.int32, q.shape, 0)
                qmax = jnp.max(q, axis=0, keepdims=True)
                # Sentinel clamped to a valid index so NaN columns never go out of range.
                act = jnp.min(jnp.where(q == qmax, idx, action_dim - 1),
                              axis=0, keepdims=True).astype(jnp.int32)
            if emit_q:
                # Pack the action row into the same f32 output buffer (single DMA/step).
                out_ref[action_dim:action_dim + 1, :] = pltpu.bitcast(act, jnp.float32)
            else:
                out_ref[...] = act

    return kernel


@functools.partial(jax.jit,
                   static_argnames=("block_b", "return_q", "return_action"))
def qnet_forward(x, w1, b1, w2, b2, *, block_b=8192,
                 return_q=True, return_action=False):
    """x: (B, S) f32; w1: (S, H); b1: (H,); w2: (H, A); b2: (A,).

    return_q only        -> q (B, A) f32                      (module forward semantics)
    return_action only   -> action (B,) int32  (greedy argmax, rollout fast path)
    both                 -> (q, action), packed into one kernel output
    """
    assert return_q or return_action
    B, S = x.shape
    H = w1.shape[1]
    A = w2.shape[1]

    # Batch tile: a single grid step for typical batches; always lane-aligned; VMEM-capped.
    tb = min(_round_up(B, 128), _round_up(block_b, 128), _TB_MAX)
    Bp = _round_up(B, tb)
    grid = (Bp // tb,)

    x_pad = x if Bp == B else jnp.pad(x, ((0, Bp - B), (0, 0)))     # rows only; no transpose
    w1T = jnp.transpose(w1)                                         # (H, S)   ~2 KB
    w2T = jnp.transpose(w2)                                         # (A, H)   ~1 KB
    b1c = b1.reshape(H, 1)
    b2c = b2.reshape(A, 1)

    if return_q and return_action:
        out_rows, out_dtype = A + 1, jnp.float32                    # q rows + bitcast act row
    elif return_q:
        out_rows, out_dtype = A, jnp.float32
    else:
        out_rows, out_dtype = 1, jnp.int32

    cost = pl.CostEstimate(
        flops=2 * Bp * (S * H + H * A),
        transcendentals=0,
        bytes_accessed=4 * (Bp * S + S * H + H + H * A + A) + 4 * Bp * out_rows,
    )

    kernel = _make_qnet_kernel(A, return_q, return_action)

    out = pl.pallas_call(
        kernel,
        grid=grid,
        in_specs=[
            pl.BlockSpec((tb, S), lambda i: (i, 0)),    # x tile: contiguous HBM read
            pl.BlockSpec((H, S), lambda i: (0, 0)),     # w1^T: VMEM-resident across steps
            pl.BlockSpec((H, 1), lambda i: (0, 0)),     # b1
            pl.BlockSpec((A, H), lambda i: (0, 0)),     # w2^T
            pl.BlockSpec((A, 1), lambda i: (0, 0)),     # b2
        ],
        out_specs=pl.BlockSpec((out_rows, tb), lambda i: (0, i)),   # lane-dense, one DMA/step
        out_shape=jax.ShapeDtypeStruct((out_rows, Bp), out_dtype),
        compiler_params=pltpu.CompilerParams(
            dimension_semantics=("parallel",),          # v7x: shard multi-step grids over 2 TCs
        ),
        cost_estimate=cost,
    )(x_pad, w1T, b1c, w2T, b2c)

    if return_q and return_action:
        q = jnp.transpose(out[:A, :B])                              # (B, A)
        act = jax.lax.bitcast_convert_type(out[A, :B], jnp.int32)   # (B,)
        return q, act
    if return_q:
        return jnp.transpose(out[:, :B])                            # (B, A)
    return out[0, :B]                                               # (B,) int32


def init_qnet_params(key, state_dim, hidden_dim, action_dim):
    # Mimics torch.nn.Linear default init: U(-1/sqrt(fan_in), 1/sqrt(fan_in)).
    k1, k2, k3, k4 = jax.random.split(key, 4)
    lim1 = 1.0 / jnp.sqrt(jnp.float32(state_dim))
    lim2 = 1.0 / jnp.sqrt(jnp.float32(hidden_dim))
    # Stored as (in_features, out_features) == PyTorch weight transposed.
    w1 = jax.random.uniform(k1, (state_dim, hidden_dim), jnp.float32, -lim1, lim1)
    b1 = jax.random.uniform(k2, (hidden_dim,), jnp.float32, -lim1, lim1)
    w2 = jax.random.uniform(k3, (hidden_dim, action_dim), jnp.float32, -lim2, lim2)
    b2 = jax.random.uniform(k4, (action_dim,), jnp.float32, -lim2, lim2)
    return w1, b1, w2, b2


if __name__ == "__main__":
    # CartPole-v0: state_dim=4, action_dim=2; hidden_dim=128 per the module.
    state_dim, hidden_dim, action_dim = 4, 128, 2

    key = jax.random.PRNGKey(0)
    kx1, kx2, kp = jax.random.split(key, 3)
    w1, b1, w2, b2 = init_qnet_params(kp, state_dim, hidden_dim, action_dim)

    def ref_forward(x):
        return jnp.maximum(x @ w1 + b1[None, :], 0.0) @ w2 + b2[None, :]

    # Case 1: small batch -> pads to one 128-wide tile, grid == 1; fused q + greedy action.
    x1 = jax.random.normal(kx1, (32, state_dim), jnp.float32)
    q1, a1 = qnet_forward(x1, w1, b1, w2, b2, return_action=True)
    jax.block_until_ready((q1, a1))
    rq1 = ref_forward(x1)
    assert q1.shape == (32, action_dim) and a1.shape == (32,)
    assert jnp.allclose(q1, rq1, atol=1e-5, rtol=1e-5)
    assert jnp.array_equal(a1, jnp.argmax(rq1, axis=-1).astype(jnp.int32))

    # Case 2: batch not a multiple of 128 + small block_b -> exercises multi-step grid
    # and batch padding; q-only (module semantics) and act-only (rollout) variants.
    x2 = jax.random.normal(kx2, (300, state_dim), jnp.float32)
    q2 = qnet_forward(x2, w1, b1, w2, b2, block_b=128)                       # q only
    a2 = qnet_forward(x2, w1, b1, w2, b2, block_b=128,
                      return_q=False, return_action=True)                    # act only
    jax.block_until_ready((q2, a2))
    rq2 = ref_forward(x2)
    assert q2.shape == (300, action_dim) and a2.shape == (300,)
    assert jnp.allclose(q2, rq2, atol=1e-5, rtol=1e-5)
    assert jnp.array_equal(a2, jnp.argmax(rq2, axis=-1).astype(jnp.int32))

    print("KERNEL_OK")
</pallas_src>

<mosaic_0001>
module attributes {stable_mosaic.version = 11 : i64} {
  func.func @kernel(%arg0: i32, %arg1: memref<128x4xf32, #tpu.memory_space<vmem>>, %arg2: memref<128x4xf32, #tpu.memory_space<vmem>>, %arg3: memref<128x1xf32, #tpu.memory_space<vmem>>, %arg4: memref<2x128xf32, #tpu.memory_space<vmem>>, %arg5: memref<2x1xf32, #tpu.memory_space<vmem>>, %arg6: memref<3x128xf32, #tpu.memory_space<vmem>>) attributes {dimension_semantics = [#tpu.dimension_semantics<parallel>], iteration_bounds = array<i64: 1>, scalar_prefetch = 0 : i64, scratch_operands = 0 : i64, tpu.core_type = #tpu.core_type<tc>, window_params = [{transform_indices = @transform_0, window_bounds = array<i64: 128, 4>}, {pipeline_mode = #tpu.pipeline_mode<synchronous>, transform_indices = @transform_1, window_bounds = array<i64: 128, 4>}, {pipeline_mode = #tpu.pipeline_mode<synchronous>, transform_indices = @transform_2, window_bounds = array<i64: 128, 1>}, {pipeline_mode = #tpu.pipeline_mode<synchronous>, transform_indices = @transform_3, window_bounds = array<i64: 2, 128>}, {pipeline_mode = #tpu.pipeline_mode<synchronous>, transform_indices = @transform_4, window_bounds = array<i64: 2, 1>}, {transform_indices = @transform_5, window_bounds = array<i64: 3, 128>}]} {
    %c0 = arith.constant 0 : index
    %c0_0 = arith.constant 0 : index
    %0 = vector.load %arg2[%c0, %c0_0] : memref<128x4xf32, #tpu.memory_space<vmem>>, vector<128x4xf32>
    %c0_1 = arith.constant 0 : index
    %c0_2 = arith.constant 0 : index
    %1 = vector.load %arg1[%c0_1, %c0_2] : memref<128x4xf32, #tpu.memory_space<vmem>>, vector<128x4xf32>
    %cst = arith.constant dense<0.000000e+00> : vector<128x128xf32>
    %2 = tpu.matmul %0, %1, %cst {dimension_numbers = #tpu.dot_dimension_numbers<[1], [1], [0], [0], [0, 0, 1, 0], [], []>} : vector<128x4xf32>, vector<128x4xf32>, vector<128x128xf32> -> vector<128x128xf32>
    %c0_3 = arith.constant 0 : index
    %c0_4 = arith.constant 0 : index
    %3 = vector.load %arg3[%c0_3, %c0_4] : memref<128x1xf32, #tpu.memory_space<vmem>>, vector<128x1xf32>
    %4 = vector.broadcast %3 : vector<128x1xf32> to vector<128x128xf32>
    %5 = arith.addf %2, %4 : vector<128x128xf32>
    %cst_5 = arith.constant 0.000000e+00 : f32
    %6 = vector.broadcast %cst_5 : f32 to vector<128x128xf32>
    %7 = arith.maximumf %5, %6 : vector<128x128xf32>
    %c0_6 = arith.constant 0 : index
    %c0_7 = arith.constant 0 : index
    %8 = vector.load %arg4[%c0_6, %c0_7] : memref<2x128xf32, #tpu.memory_space<vmem>>, vector<2x128xf32>
    %cst_8 = arith.constant dense<0.000000e+00> : vector<2x128xf32>
    %9 = tpu.matmul %8, %7, %cst_8 {dimension_numbers = #tpu.dot_dimension_numbers<[1], [0], [0], [1], [0, 0, 1, 1], [], []>} : vector<2x128xf32>, vector<128x128xf32>, vector<2x128xf32> -> vector<2x128xf32>
    %c0_9 = arith.constant 0 : index
    %c0_10 = arith.constant 0 : index
    %10 = vector.load %arg5[%c0_9, %c0_10] : memref<2x1xf32, #tpu.memory_space<vmem>>, vector<2x1xf32>
    %11 = vector.broadcast %10 : vector<2x1xf32> to vector<2x128xf32>
    %12 = arith.addf %9, %11 : vector<2x128xf32>
    %c0_11 = arith.constant 0 : index
    %c0_12 = arith.constant 0 : index
    %13 = vector.load %arg6[%c0_11, %c0_12] : memref<3x128xf32, #tpu.memory_space<vmem>>, vector<2x128xf32>
    tpu.vector_store %arg6[%c0_11, %c0_12], %12 {strides = array<i32>} : memref<3x128xf32, #tpu.memory_space<vmem>>, vector<2x128xf32>,
    %14 = vector.extract_strided_slice %12 {offsets = [1, 0], sizes = [1, 128], strides = [1, 1]} : vector<2x128xf32> to vector<1x128xf32>
    %15 = vector.extract_strided_slice %12 {offsets = [0, 0], sizes = [1, 128], strides = [1, 1]} : vector<2x128xf32> to vector<1x128xf32>
    %16 = arith.cmpf ogt, %14, %15 : vector<1x128xf32>
    %17 = arith.extui %16 : vector<1x128xi1> to vector<1x128xi32>
    %18 = tpu.bitcast %17 : vector<1x128xi32> -> vector<1x128xf32>
    %c2 = arith.constant 2 : index
    %c0_13 = arith.constant 0 : index
    %19 = vector.load %arg6[%c2, %c0_13] : memref<3x128xf32, #tpu.memory_space<vmem>>, vector<1x128xf32>
    tpu.vector_store %arg6[%c2, %c0_13], %18 {strides = array<i32>} : memref<3x128xf32, #tpu.memory_space<vmem>>, vector<1x128xf32>,
    return
  }
  func.func @transform_0(%arg0: i32) -> (i32, i32) {
    %c0_i32 = arith.constant 0 : i32
    %c0_i32_0 = arith.constant 0 : i32
    return %arg0, %c0_i32 : i32, i32
  }
  func.func @transform_1(%arg0: i32) -> (i32, i32) {
    %c0_i32 = arith.constant 0 : i32
    %c0_i32_0 = arith.constant 0 : i32
    %c0_i32_1 = arith.constant 0 : i32
    return %c0_i32, %c0_i32_0 : i32, i32
  }
  func.func @transform_2(%arg0: i32) -> (i32, i32) {
    %c0_i32 = arith.constant 0 : i32
    %c0_i32_0 = arith.constant 0 : i32
    %c0_i32_1 = arith.constant 0 : i32
    return %c0_i32, %c0_i32_0 : i32, i32
  }
  func.func @transform_3(%arg0: i32) -> (i32, i32) {
    %c0_i32 = arith.constant 0 : i32
    %c0_i32_0 = arith.constant 0 : i32
    %c0_i32_1 = arith.constant 0 : i32
    return %c0_i32, %c0_i32_0 : i32, i32
  }
  func.func @transform_4(%arg0: i32) -> (i32, i32) {
    %c0_i32 = arith.constant 0 : i32
    %c0_i32_0 = arith.constant 0 : i32
    %c0_i32_1 = arith.constant 0 : i32
    return %c0_i32, %c0_i32_0 : i32, i32
  }
  func.func @transform_5(%arg0: i32) -> (i32, i32) {
    %c0_i32 = arith.constant 0 : i32
    %c0_i32_0 = arith.constant 0 : i32
    return %c0_i32, %arg0 : i32, i32
  }
}

</mosaic_0001>

<bundles_post_ra>
// kernel: qnet_forward.1
= control target key start
LH: loop header
LB: loop body
LE: loop exit
PB: predicated region body
PF: predicated region fallthrough
CT: control target
= control target key end

     0   :  { %vm148_vm0 = vcmask 31744   ;;  %v745_v3 = vmov 0   ;;  %v746_v59 = vmov 0.0|0.0   ;;  %vm747_vm2 = vmmov 0   ;;  %s1000_s0 = inlined_call_operand.vmem [shape: f32[128,4], index: 0, kind: input, shape index: {}]   ;;  %s1001_s1 = inlined_call_operand.vmem [shape: f32[128,4], index: 1, kind: input, shape index: {}]   ;;  %s1002_s2 = inlined_call_operand.vmem [shape: f32[128,1], index: 2, kind: input, shape index: {}]   ;;  %s1003_s4 = inlined_call_operand.vmem [shape: f32[2,1], index: 4, kind: input, shape index: {}]   ;;  %s1004_s3 = inlined_call_operand.vmem [shape: f32[2,128], index: 3, kind: input, shape index: {}]   ;;  %s1005_s5 = inlined_call_operand.vmem [shape: f32[3,128], index: 5, kind: output, shape index: {}]  }
   0x1   :  { %v36_v0 = vld [vmem:[%s1000_s0] sm:$0xff]  ;;  %v37_v1 = vld [vmem:[%s1000_s0 + $0x8] sm:$0xff]  ;;  %vm787_vm1 = vmpackc.low %vm148_vm0, %vm148_vm0  ;;  %743 = vset.pattern.permute.xlu0 %v745_v3  ;;  %744 = vset.pattern.permute.xlu1 %v745_v3  ;;  %v748_v60 = vmov 0.0  }
   0x2   :  { %v667_v4 = vpack.c.bf16 %v37_v1, %v36_v0  ;;  %v38_v5 = vld [vmem:[%s1000_s0 + $0x10] sm:$0xff]  ;;  %v39_v6 = vld [vmem:[%s1000_s0 + $0x18] sm:$0xff]  ;;  %v20_v8 = vld [vmem:[%s1001_s1] sm:$0xff]  ;;  %715 = vmatprep.subr.bf16.mxu1 %v746_v59  ;;  %664 = vmatprep.mubr.msk.f32.mxu1 %vm747_vm2, %v748_v60 }
   0x3   :  { %v673_v7 = vpack.c.bf16 %v39_v6, %v38_v5  ;;  %v40_v9 = vld [vmem:[%s1000_s0 + $0x20] sm:$0xff]  ;;  %v41_v10 = vld [vmem:[%s1000_s0 + $0x28] sm:$0xff]  ;;  %608 = vmatprep.mubr.msk.f32.mxu0 %vm148_vm0, %v20_v8  ;;  %v54_v13 = vld [vmem:[%s1002_s2 + $0x10] sm:$0xff] }
   0x4   :  { %669 = vmatprep.subr.msk.bf16.mxu0 %vm787_vm1, %v667_v4  ;;  %v679_v11 = vpack.c.bf16 %v41_v10, %v40_v9  ;;  %v52_v12 = vld [vmem:[%s1002_s2] sm:$0xff]  ;;  %v53_v14 = vld [vmem:[%s1002_s2 + $0x8] sm:$0xff]  ;;  %80 = vperm.xlu1 %744, %v54_v13   ;;  %v42_v15 = vld [vmem:[%s1000_s0 + $0x30] sm:$0xff] }
   0x5   :  { %672 = vmatpush3.bf16.xpose.msk.msra.mxu0 %vm787_vm1, %v667_v4  ;;  %70 = vperm.xlu0 %743, %v52_v12   ;;  %v43_v16 = vld [vmem:[%s1000_s0 + $0x38] sm:$0xff]  ;;  %v56_v19 = vld [vmem:[%s1002_s2 + $0x20] sm:$0xff]  ;;  %v57_v20 = vld [vmem:[%s1002_s2 + $0x28] sm:$0xff] }
   0x6   :  { %675 = vmatprep.subr.msk.bf16.mxu0 %vm787_vm1, %v673_v7  ;;  %v55_v17 = vld [vmem:[%s1002_s2 + $0x18] sm:$0xff]  ;;  %v685_v18 = vpack.c.bf16 %v43_v16, %v42_v15  ;;  %v58_v21 = vld [vmem:[%s1002_s2 + $0x30] sm:$0xff]  ;;  %v44_v22 = vld [vmem:[%s1000_s0 + $0x40] sm:$0xff] }
   0x7   :  { %v45_v23 = vld [vmem:[%s1000_s0 + $0x48] sm:$0xff]  ;;  %v59_v24 = vld [vmem:[%s1002_s2 + $0x38] sm:$0xff]  ;;  %v60_v26 = vld [vmem:[%s1002_s2 + $0x40] sm:$0xff] }
   0x8   :  { %85 = vperm.xlu1 %744, %v55_v17   ;;  %v691_v25 = vpack.c.bf16 %v45_v23, %v44_v22  ;;  %v61_v27 = vld [vmem:[%s1002_s2 + $0x48] sm:$0xff]  ;;  %v62_v28 = vld [vmem:[%s1002_s2 + $0x50] sm:$0xff]  ;;  %v47_v30 = vld [vmem:[%s1000_s0 + $0x58] sm:$0xff] }
   0x9   :  { %75 = vperm.xlu0 %743, %v53_v14   ;;  %v46_v29 = vld [vmem:[%s1000_s0 + $0x50] sm:$0xff]  ;;  %v63_v31 = vld [vmem:[%s1002_s2 + $0x58] sm:$0xff]  ;;  %v64_v33 = vld [vmem:[%s1002_s2 + $0x60] sm:$0xff] }
   0xa   :  { %v697_v32 = vpack.c.bf16 %v47_v30, %v46_v29  ;;  %v65_v34 = vld [vmem:[%s1002_s2 + $0x68] sm:$0xff]  ;;  %v66_v35 = vld [vmem:[%s1002_s2 + $0x70] sm:$0xff]  ;;  %v48_v36 = vld [vmem:[%s1000_s0 + $0x60] sm:$0xff] }
   0xb   :  { %v49_v37 = vld [vmem:[%s1000_s0 + $0x68] sm:$0xff]  ;;  %v67_v38 = vld [vmem:[%s1002_s2 + $0x78] sm:$0xff]  ;;  %v407_v40 = vld [vmem:[%s1003_s4] sm:$0x3] }
   0xc   :  { %95 = vperm.xlu1 %744, %v57_v20   ;;  %v703_v39 = vpack.c.bf16 %v49_v37, %v48_v36  ;;  %v50_v41 = vld [vmem:[%s1000_s0 + $0x70] sm:$0xff]  ;;  %v51_v42 = vld [vmem:[%s1000_s0 + $0x78] sm:$0xff]  ;;  %v21_v44 = vld [vmem:[%s1001_s1 + $0x8] sm:$0xff] }
   0xd   :  { %678 = vmatpush3.bf16.xpose.msk.msra.mxu0 %vm787_vm1, %v673_v7  ;;  %90 = vperm.xlu0 %743, %v56_v19   ;;  %v709_v43 = vpack.c.bf16 %v51_v42, %v50_v41  ;;  %v22_v45 = vld [vmem:[%s1001_s1 + $0x10] sm:$0xff]  ;;  %v23_v46 = vld [vmem:[%s1001_s1 + $0x18] sm:$0xff]  ;;  %v24_v47 = vld [vmem:[%s1001_s1 + $0x20] sm:$0xff] }
   0xe   :  { %681 = vmatprep.subr.msk.bf16.mxu0 %vm787_vm1, %v679_v11  ;;  %v25_v48 = vld [vmem:[%s1001_s1 + $0x28] sm:$0xff]  ;;  %v26_v49 = vld [vmem:[%s1001_s1 + $0x30] sm:$0xff]  ;;  %v27_v50 = vld [vmem:[%s1001_s1 + $0x38] sm:$0xff] }
   0xf   :  { %v28_v51 = vld [vmem:[%s1001_s1 + $0x40] sm:$0xff]  ;;  %v29_v52 = vld [vmem:[%s1001_s1 + $0x48] sm:$0xff]  ;;  %v30_v53 = vld [vmem:[%s1001_s1 + $0x50] sm:$0xff] }
  0x10   :  { %105 = vperm.xlu1 %744, %v59_v24   ;;  %v31_v54 = vld [vmem:[%s1001_s1 + $0x58] sm:$0xff]  ;;  %v32_v55 = vld [vmem:[%s1001_s1 + $0x60] sm:$0xff]  ;;  %v33_v56 = vld [vmem:[%s1001_s1 + $0x68] sm:$0xff] }
  0x11   :  { %100 = vperm.xlu0 %743, %v58_v21   ;;  %v34_v57 = vld [vmem:[%s1001_s1 + $0x70] sm:$0xff]  ;;  %v35_v58 = vld [vmem:[%s1001_s1 + $0x78] sm:$0xff] }
  0x14   :  { %115 = vperm.xlu1 %744, %v61_v27  }
  0x15   :  { %684 = vmatpush3.bf16.xpose.msk.msra.mxu0 %vm787_vm1, %v679_v11  ;;  %110 = vperm.xlu0 %743, %v60_v26  }
  0x16   :  { %687 = vmatprep.subr.msk.bf16.mxu0 %vm787_vm1, %v685_v18 }
  0x18   :  { %125 = vperm.xlu1 %744, %v63_v31  }
  0x19   :  { %120 = vperm.xlu0 %743, %v62_v28  }
  0x1c   :  { %135 = vperm.xlu1 %744, %v65_v34  }
  0x1d   :  { %690 = vmatpush3.bf16.xpose.msk.msra.mxu0 %vm787_vm1, %v685_v18  ;;  %130 = vperm.xlu0 %743, %v64_v33  }
  0x1e   :  { %693 = vmatprep.subr.msk.bf16.mxu0 %vm787_vm1, %v691_v25 }
  0x20   :  { %145 = vperm.xlu1 %744, %v67_v38  }
  0x21   :  { %140 = vperm.xlu0 %743, %v66_v35  }
  0x25   :  { %696 = vmatpush3.bf16.xpose.msk.msra.mxu0 %vm787_vm1, %v691_v25  ;;  %410 = vperm.xlu0 %743, %v407_v40  }
  0x26   :  { %699 = vmatprep.subr.msk.bf16.mxu0 %vm787_vm1, %v697_v32 }
  0x2d   :  { %702 = vmatpush3.bf16.xpose.msk.msra.mxu0 %vm787_vm1, %v697_v32 }
  0x2e   :  { %705 = vmatprep.subr.msk.bf16.mxu0 %vm787_vm1, %v703_v39 }
  0x35   :  { %708 = vmatpush3.bf16.xpose.msk.msra.mxu0 %vm787_vm1, %v703_v39 }
  0x36   :  { %711 = vmatprep.subr.msk.bf16.mxu0 %vm787_vm1, %v709_v43 }
  0x3d   :  { %714 = vmatpush3.bf16.xpose.msk.msra.mxu0 %vm787_vm1, %v709_v43 }
  0x44   :  { %609 = vmatmul.mubr.msk.f32.vlgmr.msra.gmra.mrb[0].mxu0 %vm148_vm0, %v21_v44 }
  0x45   :  { %611 = vmatprep.mubr.msk.f32.mxu0 %vm148_vm0, %v22_v45 }
  0x48   :  { %612 = vmatmul.mubr.msk.f32.gmra.mrb[2].mxu0 %vm148_vm0, %v23_v46 }
  0x49   :  { %614 = vmatprep.mubr.msk.f32.mxu0 %vm148_vm0, %v24_v47 }
  0x4c   :  { %615 = vmatmul.mubr.msk.f32.gmra.mrb[4].mxu0 %vm148_vm0, %v25_v48 }
  0x4d   :  { %617 = vmatprep.mubr.msk.f32.mxu0 %vm148_vm0, %v26_v49 }
  0x50   :  { %618 = vmatmul.mubr.msk.f32.gmra.mrb[6].mxu0 %vm148_vm0, %v27_v50 }
  0x51   :  { %620 = vmatprep.mubr.msk.f32.mxu0 %vm148_vm0, %v28_v51 }
  0x54   :  { %621 = vmatmul.mubr.msk.f32.gmra.mrb[8].mxu0 %vm148_vm0, %v29_v52 }
  0x55   :  { %623 = vmatprep.mubr.msk.f32.mxu0 %vm148_vm0, %v30_v53 }
  0x58   :  { %624 = vmatmul.mubr.msk.f32.gmra.mrb[10].mxu0 %vm148_vm0, %v31_v54 }
  0x59   :  { %626 = vmatprep.mubr.msk.f32.mxu0 %vm148_vm0, %v32_v55 }
  0x5c   :  { %627 = vmatmul.mubr.msk.f32.gmra.mrb[12].mxu0 %vm148_vm0, %v33_v56 }
  0x5d   :  { %629 = vmatprep.mubr.msk.f32.mxu0 %vm148_vm0, %v34_v57 }
  0x60   :  { %630 = vmatmul.mubr.msk.f32.gmra.mrb[14].mxu0 %vm148_vm0, %v35_v58 }
  0x83   :  { %v81_v61 = vpop.permute.xlu1 %80 }
  0x84   :  { %v71_v62 = vpop.permute.xlu0 %70 }
  0x87   :  { %v86_v63 = vpop.permute.xlu1 %85 }
  0x88   :  { %v76_v0 = vpop.permute.xlu0 %75 }
  0x8b   :  { %v96_v1 = vpop.permute.xlu1 %95 }
  0x8c   :  { %v91_v2 = vpop.permute.xlu0 %90 }
  0x8f   :  { %v106_v9 = vpop.permute.xlu1 %105 }
  0x90   :  { %v101_v12 = vpop.permute.xlu0 %100 }
  0x93   :  { %v116_v22 = vpop.permute.xlu1 %115 }
  0x94   :  { %v111_v25 = vpop.permute.xlu0 %110 }
  0x97   :  { %v126_v34 = vpop.permute.xlu1 %125 }
  0x98   :  { %v121_v37 = vpop.permute.xlu0 %120 }
  0x9b   :  { %v136_v47 = vpop.permute.xlu1 %135 }
  0x9c   :  { %v131_v50 = vpop.permute.xlu0 %130 }
  0x9f   :  { %v146_v60 = vpop.permute.xlu1 %145 }
 0x117   :  { %v610_v4 = vpop.f32.mrb[0].mxu0 }
 0x118   :  { %v317_v5 = vadd.f32 %v610_v4, %v76_v0  ;;  %v311_v6 = vpop.f32.mrb[1].mxu0 }
 0x119   :  { %v312_v7 = vadd.f32 %v311_v6, %v71_v62 }
 0x11a   :  { %v391_v8 = vmax.f32 %v317_v5, 0.0 }
 0x11b   :  { %v390_v10 = vmax.f32 %v312_v7, 0.0  ;;  %v613_v11 = vpop.f32.mrb[2].mxu0 }
 0x11c   :  { %v327_v13 = vadd.f32 %v613_v11, %v86_v63  ;;  %v321_v14 = vpop.f32.mrb[3].mxu0  ;;  %v141_v63 = vpop.permute.xlu0 %140 }
 0x11d   :  { %v322_v15 = vadd.f32 %v321_v14, %v81_v61  ;;  %v716_v16 = vpack.c.bf16 %v391_v8, %v390_v10  ;;  %v406_v8 = vld [vmem:[%s1004_s3] sm:$0x3] }
 0x11e   :  { %v393_v17 = vmax.f32 %v327_v13, 0.0 }
 0x11f   :  { %v392_v18 = vmax.f32 %v322_v15, 0.0  ;;  %v616_v19 = vpop.f32.mrb[4].mxu0  ;;  %717 = vmatpush3.bf16.msra.mxu1 %v716_v16 }
 0x120   :  { %v337_v20 = vadd.f32 %v616_v19, %v96_v1  ;;  %v331_v21 = vpop.f32.mrb[5].mxu0  ;;  %718 = vmatprep.subr.bf16.mxu1 %v746_v59 }
 0x121   :  { %v719_v23 = vpack.c.bf16 %v393_v17, %v392_v18  ;;  %v332_v24 = vadd.f32 %v331_v21, %v91_v2 }
 0x122   :  { %v395_v26 = vmax.f32 %v337_v20, 0.0 }
 0x123   :  { %v394_v27 = vmax.f32 %v332_v24, 0.0  ;;  %v619_v28 = vpop.f32.mrb[6].mxu0  ;;  %720 = vmatpush3.bf16.msra.mxu1 %v719_v23 }
 0x124   :  { %v347_v29 = vadd.f32 %v619_v28, %v106_v9  ;;  %v341_v30 = vpop.f32.mrb[7].mxu0  ;;  %721 = vmatprep.subr.bf16.mxu1 %v746_v59  ;;  %v411_v9 = vpop.permute.xlu0 %410 }
 0x125   :  { %v722_v31 = vpack.c.bf16 %v395_v26, %v394_v27  ;;  %v342_v32 = vadd.f32 %v341_v30, %v101_v12 }
 0x126   :  { %v397_v33 = vmax.f32 %v347_v29, 0.0 }
 0x127   :  { %v396_v35 = vmax.f32 %v342_v32, 0.0  ;;  %v622_v36 = vpop.f32.mrb[8].mxu0  ;;  %723 = vmatpush3.bf16.msra.mxu1 %v722_v31 }
 0x128   :  { %v357_v38 = vadd.f32 %v622_v36, %v116_v22  ;;  %v351_v39 = vpop.f32.mrb[9].mxu0  ;;  %724 = vmatprep.subr.bf16.mxu1 %v746_v59 }
 0x129   :  { %v725_v40 = vpack.c.bf16 %v397_v33, %v396_v35  ;;  %v352_v41 = vadd.f32 %v351_v39, %v111_v25 }
 0x12a   :  { %v399_v42 = vmax.f32 %v357_v38, 0.0 }
 0x12b   :  { %v398_v43 = vmax.f32 %v352_v41, 0.0  ;;  %v625_v44 = vpop.f32.mrb[10].mxu0  ;;  %726 = vmatpush3.bf16.msra.mxu1 %v725_v40 }
 0x12c   :  { %v367_v45 = vadd.f32 %v625_v44, %v126_v34  ;;  %v361_v46 = vpop.f32.mrb[11].mxu0  ;;  %727 = vmatprep.subr.bf16.mxu1 %v746_v59 }
 0x12d   :  { %v728_v48 = vpack.c.bf16 %v399_v42, %v398_v43  ;;  %v362_v49 = vadd.f32 %v361_v46, %v121_v37 }
 0x12e   :  { %v401_v51 = vmax.f32 %v367_v45, 0.0 }
 0x12f   :  { %v400_v52 = vmax.f32 %v362_v49, 0.0  ;;  %v628_v53 = vpop.f32.mrb[12].mxu0  ;;  %729 = vmatpush3.bf16.msra.mxu1 %v728_v48 }
 0x130   :  { %v377_v54 = vadd.f32 %v628_v53, %v136_v47  ;;  %v371_v55 = vpop.f32.mrb[13].mxu0  ;;  %730 = vmatprep.subr.bf16.mxu1 %v746_v59 }
 0x131   :  { %v731_v56 = vpack.c.bf16 %v401_v51, %v400_v52  ;;  %v372_v57 = vadd.f32 %v371_v55, %v131_v50 }
 0x132   :  { %v403_v58 = vmax.f32 %v377_v54, 0.0 }
 0x133   :  { %v402_v61 = vmax.f32 %v372_v57, 0.0  ;;  %v631_v62 = vpop.f32.mrb[14].mxu0  ;;  %732 = vmatpush3.bf16.msra.mxu1 %v731_v56 }
 0x134   :  { %v387_v0 = vadd.f32 %v631_v62, %v146_v60  ;;  %v381_v1 = vpop.f32.mrb[15].mxu0  ;;  %733 = vmatprep.subr.bf16.mxu1 %v746_v59 }
 0x135   :  { %v734_v2 = vpack.c.bf16 %v403_v58, %v402_v61  ;;  %v382_v4 = vadd.f32 %v381_v1, %v141_v63 }
 0x136   :  { %v405_v5 = vmax.f32 %v387_v0, 0.0 }
 0x137   :  { %v404_v6 = vmax.f32 %v382_v4, 0.0  ;;  %735 = vmatpush3.bf16.msra.mxu1 %v734_v2 }
 0x138   :  { %736 = vmatprep.subr.bf16.mxu1 %v746_v59 }
 0x139   :  { %v737_v7 = vpack.c.bf16 %v405_v5, %v404_v6 }
 0x13b   :  { %738 = vmatpush3.bf16.msra.mxu1 %v737_v7 }
 0x13e   :  { %665 = vmatmul.mubr.f32.vlgmr.msra.gmra.mrb[0].mxu1 %v406_v8 }
 0x211   :  { %v479_v10 = vpop.f32.mrb[0].mxu1 }
 0x212   :  { %v480_v11 = vadd.f32 %v479_v10, %v411_v9  ;;  %v666_v12 = vpop.f32.mrb[1].mxu1 }
 0x214   :  { %483 = vst [vmem:[%s1005_s5] sm:$0x3] %v480_v11  ;;  %v485_v13 = vrot.slane %v480_v11, 7 }
 0x216   :  { %vm487_vm3 = vcmp.gt.f32.partialorder %v480_v11, %v485_v13 }
 0x217   :  { %v488_v14 = vsel %vm487_vm3, 1, %v745_v3 }
 0x218   :  { %490 = vst [vmem:[%s1005_s5 + $0x1] sm:$0x2] %v488_v14 }

</bundles_post_ra>
